<compile_context>
chip_gen: v7x
topology: tpu7x:2x2x1
jax: 0.10.0
libtpu: 0.0.40
codegen_flags: <defaults>
</compile_context>

<pallas_src>
import functools

import jax
import jax.numpy as jnp
from jax.experimental import pallas as pl
from jax.experimental.pallas import tpu as pltpu

LANES = 128
SUBLANES = 8
NUM_CORES = 2              # v7x has 2 TensorCores; extra axis is free on v5e/v6e
DEFAULT_BLOCK_ROWS = 1024  # 1024 x 128 x f32 = 512 KiB per input per buffer


def _round_up(x, m):
    return (x + m - 1) // m * m


def _wbce_kernel(ps_ref, lab_ref, out_ref, acc_ref, *,
                 w_p, w_n, epsilon, nblocks, steps_per_core, tail_elems):
    c = pl.program_id(0)           # core-split axis ("parallel")
    s = pl.program_id(1)           # reduction axis ("arbitrary")
    g = c * steps_per_core + s     # global row-block id (may be a phantom step)

    @pl.when(s == 0)
    def _init():
        acc_ref[...] = jnp.zeros_like(acc_ref)

    def _terms(ps, lab):
        pos = (w_p * lab) * jnp.log(ps + epsilon)
        neg = (w_n * (1.0 - lab)) * jnp.log((1.0 - ps) + epsilon)
        return pos + neg

    block_rows, lanes = acc_ref.shape
    has_tail = tail_elems != block_rows * lanes    # static Python bool

    if has_tail:
        @pl.when(g < nblocks - 1)
        def _full_tile():
            acc_ref[...] += _terms(ps_ref[...].astype(jnp.float32),
                                   lab_ref[...].astype(jnp.float32))

        @pl.when(g == nblocks - 1)
        def _tail_tile():
            # Only the very last row-block is ragged: mask every flattened
            # position >= n_total (lane padding and/or rows past the end).
            rid = jax.lax.broadcasted_iota(jnp.int32, (block_rows, lanes), 0)
            lid = jax.lax.broadcasted_iota(jnp.int32, (block_rows, lanes), 1)
            valid = (rid * lanes + lid) < tail_elems
            ps = jnp.where(valid, ps_ref[...].astype(jnp.float32), 0.5)
            lab = jnp.where(valid, lab_ref[...].astype(jnp.float32), 0.0)
            acc_ref[...] += jnp.where(valid, _terms(ps, lab), 0.0)
    else:
        @pl.when(g < nblocks)      # skip phantom steps of the second "core"
        def _full_tile():
            acc_ref[...] += _terms(ps_ref[...].astype(jnp.float32),
                                   lab_ref[...].astype(jnp.float32))

    @pl.when(s == steps_per_core - 1)
    def _finalize():
        # Fold the block-shaped accumulator to one (8, 128) slab per core;
        # the tiny final reduce + divide happens in XLA on the wrapper side.
        out_ref[...] = acc_ref[...].reshape(-1, SUBLANES, lanes).sum(axis=0)


def w_bce_with_logits_loss(ps, labels, w_p, w_n, epsilon=1e-07,
                           block_rows=DEFAULT_BLOCK_ROWS):
    assert ps.shape == labels.shape
    n_total = int(ps.size)

    # Lane-dense 2D view. A contiguous reshape is free; we only pay for a
    # pad-copy when the element count is not a multiple of 128.
    ps_flat = jnp.reshape(ps, (-1,))
    lab_flat = jnp.reshape(labels, (-1,))
    lane_pad = (-n_total) % LANES
    if lane_pad:
        ps_flat = jnp.pad(ps_flat, (0, lane_pad))
        lab_flat = jnp.pad(lab_flat, (0, lane_pad))
    rows = (n_total + lane_pad) // LANES
    ps2d = ps_flat.reshape(rows, LANES)
    lab2d = lab_flat.reshape(rows, LANES)

    # Keep the sublane dim a multiple of 8; ragged last block (and any rows
    # past the array end) is zeroed by the tail mask inside the kernel.
    block_rows = min(block_rows, _round_up(rows, SUBLANES))
    nblocks = pl.cdiv(rows, block_rows)
    steps_per_core = pl.cdiv(nblocks, NUM_CORES)
    tail_elems = n_total - (nblocks - 1) * block_rows * LANES

    def in_map(c, s):
        # Clamp phantom steps to the last valid block (their compute is
        # skipped in the kernel) so the auto-pipeliner never DMAs OOB blocks.
        return (jnp.minimum(c * steps_per_core + s, nblocks - 1), 0)

    kernel = functools.partial(
        _wbce_kernel,
        w_p=float(w_p), w_n=float(w_n), epsilon=float(epsilon),
        nblocks=nblocks, steps_per_core=steps_per_core, tail_elems=tail_elems)

    partials = pl.pallas_call(
        kernel,
        out_shape=jax.ShapeDtypeStruct((NUM_CORES * SUBLANES, LANES),
                                       jnp.float32),
        grid_spec=pltpu.PrefetchScalarGridSpec(
            num_scalar_prefetch=0,
            grid=(NUM_CORES, steps_per_core),
            in_specs=[
                pl.BlockSpec((block_rows, LANES), in_map),
                pl.BlockSpec((block_rows, LANES), in_map),
            ],
            out_specs=pl.BlockSpec((SUBLANES, LANES), lambda c, s: (c, 0)),
            scratch_shapes=[pltpu.VMEM((block_rows, LANES), jnp.float32)],
        ),
        compiler_params=pltpu.CompilerParams(
            dimension_semantics=("parallel", "arbitrary")),
    )(ps2d, lab2d)

    # loss = -(sum_pos + sum_neg) / N
    return -jnp.sum(partials) / jnp.float32(n_total)


def _reference(ps, labels, w_p, w_n, epsilon=1e-07):
    ps = ps.astype(jnp.float32)
    labels = labels.astype(jnp.float32)
    loss_pos = -jnp.mean(w_p * labels * jnp.log(ps + epsilon))
    loss_neg = -jnp.mean(w_n * (1.0 - labels) * jnp.log(1.0 - ps + epsilon))
    return loss_pos + loss_neg


if __name__ == "__main__":
    key = jax.random.PRNGKey(0)
    k1, k2 = jax.random.split(key)

    # Small NCHW-like prediction/label tensors (per-pixel multi-label).
    shape = (2, 4, 16, 16)
    ps = jax.nn.sigmoid(jax.random.normal(k1, shape, jnp.float32))
    labels = (jax.random.uniform(k2, shape) > 0.5).astype(jnp.float32)

    # Deterministic "module parameters" (w_p, w_n from __init__).
    w_p = 2.0
    w_n = 0.5

    loss = w_bce_with_logits_loss(ps, labels, w_p, w_n)
    loss = jax.block_until_ready(loss)

    ref = _reference(ps, labels, w_p, w_n)
    assert jnp.allclose(loss, ref, rtol=1e-5, atol=1e-6), (loss, ref)

    print("KERNEL_OK")
</pallas_src>

<mosaic_0001>
module attributes {stable_mosaic.version = 11 : i64} {
  func.func @_wbce_kernel(%arg0: i32, %arg1: i32, %arg2: memref<16x128xf32, #tpu.memory_space<vmem>>, %arg3: memref<16x128xf32, #tpu.memory_space<vmem>>, %arg4: memref<8x128xf32, #tpu.memory_space<vmem>>, %arg5: memref<16x128xf32, #tpu.memory_space<vmem>>) attributes {dimension_semantics = [#tpu.dimension_semantics<parallel>, #tpu.dimension_semantics<arbitrary>], iteration_bounds = array<i64: 2, 1>, scalar_prefetch = 0 : i64, scratch_operands = 1 : i64, tpu.core_type = #tpu.core_type<tc>, window_params = [{transform_indices = @transform_0, window_bounds = array<i64: 16, 128>}, {transform_indices = @transform_1, window_bounds = array<i64: 16, 128>}, {transform_indices = @transform_2, window_bounds = array<i64: 8, 128>}]} {
    %c1_i32 = arith.constant 1 : i32
    %0 = arith.muli %arg0, %c1_i32 : i32
    %1 = arith.addi %0, %arg1 : i32
    %c0_i32 = arith.constant 0 : i32
    %2 = arith.cmpi eq, %arg1, %c0_i32 : i32
    %3 = arith.extui %2 : i1 to i32
    %c0_i32_0 = arith.constant 0 : i32
    %4 = arith.cmpi ne, %3, %c0_i32_0 : i32
    scf.if %4 {
      %cst = arith.constant 0.000000e+00 : f32
      %11 = vector.broadcast %cst : f32 to vector<16x128xf32>
      %c0 = arith.constant 0 : index
      %c0_5 = arith.constant 0 : index
      %12 = vector.load %arg5[%c0, %c0_5] : memref<16x128xf32, #tpu.memory_space<vmem>>, vector<16x128xf32>
      tpu.vector_store %arg5[%c0, %c0_5], %11 {strides = array<i32>} : memref<16x128xf32, #tpu.memory_space<vmem>>, vector<16x128xf32>,
    } else {
    }
    %c1_i32_1 = arith.constant 1 : i32
    %5 = arith.cmpi slt, %1, %c1_i32_1 : i32
    %6 = arith.extui %5 : i1 to i32
    %c0_i32_2 = arith.constant 0 : i32
    %7 = arith.cmpi ne, %6, %c0_i32_2 : i32
    scf.if %7 {
      %c0 = arith.constant 0 : index
      %c0_5 = arith.constant 0 : index
      %11 = vector.load %arg5[%c0, %c0_5] : memref<16x128xf32, #tpu.memory_space<vmem>>, vector<16x128xf32>
      %c0_6 = arith.constant 0 : index
      %c0_7 = arith.constant 0 : index
      %12 = vector.load %arg2[%c0_6, %c0_7] : memref<16x128xf32, #tpu.memory_space<vmem>>, vector<16x128xf32>
      %c0_8 = arith.constant 0 : index
      %c0_9 = arith.constant 0 : index
      %13 = vector.load %arg3[%c0_8, %c0_9] : memref<16x128xf32, #tpu.memory_space<vmem>>, vector<16x128xf32>
      %cst = arith.constant 2.000000e+00 : f32
      %14 = vector.broadcast %cst : f32 to vector<16x128xf32>
      %15 = arith.mulf %14, %13 : vector<16x128xf32>
      %cst_10 = arith.constant 1.000000e-07 : f32
      %16 = vector.broadcast %cst_10 : f32 to vector<16x128xf32>
      %17 = arith.addf %12, %16 : vector<16x128xf32>
      %18 = math.log %17 : vector<16x128xf32>
      %19 = arith.mulf %15, %18 : vector<16x128xf32>
      %cst_11 = arith.constant 1.000000e+00 : f32
      %20 = vector.broadcast %cst_11 : f32 to vector<16x128xf32>
      %21 = arith.subf %20, %13 : vector<16x128xf32>
      %cst_12 = arith.constant 5.000000e-01 : f32
      %22 = vector.broadcast %cst_12 : f32 to vector<16x128xf32>
      %23 = arith.mulf %22, %21 : vector<16x128xf32>
      %cst_13 = arith.constant 1.000000e+00 : f32
      %24 = vector.broadcast %cst_13 : f32 to vector<16x128xf32>
      %25 = arith.subf %24, %12 : vector<16x128xf32>
      %cst_14 = arith.constant 1.000000e-07 : f32
      %26 = vector.broadcast %cst_14 : f32 to vector<16x128xf32>
      %27 = arith.addf %25, %26 : vector<16x128xf32>
      %28 = math.log %27 : vector<16x128xf32>
      %29 = arith.mulf %23, %28 : vector<16x128xf32>
      %30 = arith.addf %19, %29 : vector<16x128xf32>
      %31 = arith.addf %11, %30 : vector<16x128xf32>
      %c0_15 = arith.constant 0 : index
      %c0_16 = arith.constant 0 : index
      %32 = vector.load %arg5[%c0_15, %c0_16] : memref<16x128xf32, #tpu.memory_space<vmem>>, vector<16x128xf32>
      tpu.vector_store %arg5[%c0_15, %c0_16], %31 {strides = array<i32>} : memref<16x128xf32, #tpu.memory_space<vmem>>, vector<16x128xf32>,
    } else {
    }
    %c0_i32_3 = arith.constant 0 : i32
    %8 = arith.cmpi eq, %arg1, %c0_i32_3 : i32
    %9 = arith.extui %8 : i1 to i32
    %c0_i32_4 = arith.constant 0 : i32
    %10 = arith.cmpi ne, %9, %c0_i32_4 : i32
    scf.if %10 {
      %c0 = arith.constant 0 : index
      %c0_5 = arith.constant 0 : index
      %11 = vector.load %arg5[%c0, %c0_5] : memref<16x128xf32, #tpu.memory_space<vmem>>, vector<16x128xf32>
      %12 = vector.shape_cast %11 : vector<16x128xf32> to vector<2x8x128xf32>
      %cst = arith.constant dense<0.000000e+00> : vector<8x128xf32>
      %13 = vector.multi_reduction <add>, %12, %cst [0] : vector<2x8x128xf32> to vector<8x128xf32>
      %c0_6 = arith.constant 0 : index
      %c0_7 = arith.constant 0 : index
      %14 = vector.load %arg4[%c0_6, %c0_7] : memref<8x128xf32, #tpu.memory_space<vmem>>, vector<8x128xf32>
      tpu.vector_store %arg4[%c0_6, %c0_7], %13 {strides = array<i32>} : memref<8x128xf32, #tpu.memory_space<vmem>>, vector<8x128xf32>,
    } else {
    }
    return
  }
  func.func @transform_0(%arg0: i32, %arg1: i32) -> (i32, i32) {
    %c1_i32 = arith.constant 1 : i32
    %0 = arith.muli %arg0, %c1_i32 : i32
    %1 = arith.addi %0, %arg1 : i32
    %c0_i32 = arith.constant 0 : i32
    %2 = arith.minsi %1, %c0_i32 : i32
    %c0_i32_0 = arith.constant 0 : i32
    %c0_i32_1 = arith.constant 0 : i32
    return %2, %c0_i32_0 : i32, i32
  }
  func.func @transform_1(%arg0: i32, %arg1: i32) -> (i32, i32) {
    %c1_i32 = arith.constant 1 : i32
    %0 = arith.muli %arg0, %c1_i32 : i32
    %1 = arith.addi %0, %arg1 : i32
    %c0_i32 = arith.constant 0 : i32
    %2 = arith.minsi %1, %c0_i32 : i32
    %c0_i32_0 = arith.constant 0 : i32
    %c0_i32_1 = arith.constant 0 : i32
    return %2, %c0_i32_0 : i32, i32
  }
  func.func @transform_2(%arg0: i32, %arg1: i32) -> (i32, i32) {
    %c0_i32 = arith.constant 0 : i32
    %c0_i32_0 = arith.constant 0 : i32
    return %arg0, %c0_i32 : i32, i32
  }
}

</mosaic_0001>

<bundles_post_ra>
// kernel: tpu_custom_call.1
= control target key start
LH: loop header
LB: loop body
LE: loop exit
PB: predicated region body
PF: predicated region fallthrough
CT: control target
= control target key end

     0   :  { %7 = vsyncpa [#allocation4], 0  ;;  %s937_s0 = inlined_call_operand.hbm [shape: f32[16,128], index: 0, kind: input, shape index: {}]   ;;  %s938_s1 = inlined_call_operand.hbm [shape: f32[16,128], index: 1, kind: input, shape index: {}]   ;;  %s939_s2 = inlined_call_operand.hbm [shape: f32[16,128], index: 2, kind: output, shape index: {}]  }
   0x1   :  { %9 = vsyncpa [#allocation4 + $0x1], 0 }
   0x2   :  { %10 = vsyncpa [#allocation7], 0 }
   0x3   :  { %12 = vsyncpa [#allocation7 + $0x1], 0 }
   0x4   :  { %13 = vsyncpa [#allocation5], 0 }
   0x5   :  { %15 = vsyncpa [#allocation5 + $0x1], 0  ;;  %s722_s9 = smov 0   ;;  %s724_s10 = smov 0  }
   0x6   :  { %s726_s11 = smov 0   ;;  %s728_s12 = smov 0  }
   0x7   :  { %s730_s13 = smov 0   ;;  %s732_s14 = smov 0  }
   0x8   :  { %s734_s15 = smov 0   ;;  %s736_s16 = smov 0  }
   0x9 LB: > { %s409_s17 = sadd.s32 4294967295, %s699_s16   ;;  %s410_s18 = sadd.s32 4294967294, %s699_s16   ;;  %s699_s16 = sphi %s736_s16, %s21_s16   ;;  %s695_s15 = sphi %s734_s15, %s958_s15   ;;  %s691_s14 = sphi %s732_s14, %s957_s14   ;;  %s687_s13 = sphi %s730_s13, %s927_s13   ;;  %s683_s12 = sphi %s728_s12, %s956_s12   ;;  %s679_s11 = sphi %s726_s11, %s955_s11   ;;  %s675_s10 = sphi %s724_s10, %s954_s10   ;;  %s671_s9 = sphi %s722_s9, %s953_s9  }
   0xa   : > { %s33_s19 = sadd.s32 1, %s695_s15  ;;  %p668_p1 = scmp.ne.s32.totalorder %s687_s13, 0 }
   0xb   : > { %p35_p0 = scmp.ge.s32.totalorder %s33_s19, 2  ;;  %p54_p2 = scmp.eq.s32.totalorder %s699_s16, 0 }
   0xc   : > { %p59_p3 = scmp.ne.s32.totalorder %s687_s13, %s683_s12  ;;  %p60_p5 = scmp.eq.s32.totalorder %s409_s17, 0 }
   0xd   : > { %s960_s19 = smov (%p35_p0, %s33_s19), 0  ;;  %p768_p4 = por %p668_p1, %p54_p2 }
   0xe   : > { %p772_p6 = por %p60_p5, %p59_p3  ;;  %s101_s22 = ssub.s32 %s695_s15, %s960_s19 }
   0xf   : > { %p102_p7 = scmp.eq.s32.totalorder %s101_s22, 0  ;;  %s104_s23 = sadd.s32 1, %s679_s11 }
  0x10   : > { %s943_s21 = scalar_select %p772_p6, 1, 0 }
  0x11   : > { %s780_s24 = scalar_select %p102_p7, %s679_s11, %s104_s23  }
  0x12   : > { %p114_p8 = scmp.ne.s32.totalorder %s679_s11, %s675_s10  ;;  %p115_p9 = scmp.eq.s32.totalorder %s409_s17, 1 }
  0x13   : > { %p120_p10 = scmp.ne.s32.totalorder %s675_s10, %s671_s9  ;;  %p121_p11 = scmp.eq.s32.totalorder %s410_s18, 1 }
  0x14   : > { %p786_p12 = por %p115_p9, %p114_p8  ;;  %p447_p1 = scmp.lt.s32.totalorder %s699_s16, 2 }
  0x15   : > { %p791_p0 = por %p121_p11, %p120_p10  ;;  %s701_s27 = smov [#allocation3]  }
  0x16   : > { %s944_s25 = scalar_select %p786_p12, 1, 0 }
  0x17   : > { %s945_s26 = scalar_select %p791_p0, 1, 0 }
  0x18   : > { %s155_s28 = sshll.u32 %s701_s27, 4  ;;  %p798_p2 = pnand %p447_p1, %p768_p4  ;;  %s156_s28 = int_to_ptr.vmem [resolvable:$true] %s155_s28 }
  0x19   : > { %s532_s4 = scalar_lea.hbm %s937_s0, 256 }
  0x1a   : > { %p533_p3 = scmp.ne.s32.totalorder %s937_s0, %s532_s4  ;;  %p534_p5 = pneg %p798_p2 }
  0x1b   : > { %p539_p8 = scmp.lt.u32.totalorder %s532_s4, %s532_s4  ;;  %p541_p9 = scmp.lt.u32.totalorder %s532_s4, %s937_s0 }
  0x1c   : > { %p535_p7 = pnand %p534_p5, %p533_p3 }
  0x1d   : > { %p542_p10 = por %p541_p9, %p539_p8 }
  0x1e   : > { %p536_p4 = pneg %p535_p7 }
  0x20   : > { %p543_p11 = pnand %p542_p10, %p536_p4 }
  0x22   : > { %546 = shalt.err (!%p543_p11)
}
  0x23   : > { %s547_s12 = scalar_lea.vmem %s156_s28, 256  ;;  %s554_s17 = scalar_lea.vmem %s156_s28, 512 }
  0x24   : > { %p548_p1 = scmp.ne.s32.totalorder %s156_s28, %s547_s12  ;;  %p555_p12 = scmp.lt.s32.totalorder %s156_s28, %s156_s28 }
  0x25   : > { %p556_p6 = scmp.lt.s32.totalorder %s554_s17, %s547_s12 }
  0x26   : > { %p550_p13 = pnand %p548_p1, %p534_p5 }
  0x27   : > { %p557_p3 = por %p556_p6, %p555_p12 }
  0x28   : > { %p551_p0 = pneg %p550_p13 }
  0x2a   : > { %p558_p7 = pnand %p557_p3, %p551_p0 }
  0x2c   : > { %561 = shalt.err (!%p558_p7)
}
  0x2d   : > { %s702_s18 = smov 128   ;;  %s703_s20 = smov 8  }
  0x2e   : > { %439 = dma.hbm_to_vmem [thread:$0]  (!%p798_p2), %s937_s0, 256, %s156_s28, [#allocation4], %s702_s18, %s702_s18, %s703_s20  }
  0x2f   : > { %p419_p13 = scmp.ge.s32.totalorder %s699_s16, 1  ;;  %p187_p4 = scmp.lt.s32.totalorder %s699_s16, 3 }
  0x30   : > { %s704_s30 = smov [#allocation6]   ;;  %s562_s6 = scalar_lea.hbm %s938_s1, 256 }
  0x31   : > { %p829_p8 = pnand %p419_p13, %p187_p4  ;;  %s179_s3 = sshll.u32 %s704_s30, 4  ;;  %s180_s3 = int_to_ptr.vmem [resolvable:$true] %s179_s3 }
  0x32   : > { %p563_p6 = scmp.ne.s32.totalorder %s938_s1, %s562_s6  ;;  %p569_p9 = scmp.lt.u32.totalorder %s562_s6, %s562_s6 }
  0x33   : > { %s947_s27 = scalar_select %p829_p8, 1, 0 }
  0x34   : > { %p565_p12 = pnand %p563_p6, %p534_p5  ;;  %p571_p10 = scmp.lt.u32.totalorder %s562_s6, %s938_s1 }
  0x36   : > { %p566_p0 = pneg %p565_p12  ;;  %p572_p11 = por %p571_p10, %p569_p9 }
  0x38   : > { %p573_p1 = pnand %p572_p11, %p566_p0 }
  0x3a   : > { %576 = shalt.err (!%p573_p1)
}
  0x3b   : > { %s577_s17 = scalar_lea.vmem %s180_s3, 256  ;;  %s584_s22 = scalar_lea.vmem %s180_s3, 512 }
  0x3c   : > { %p578_p3 = scmp.ne.s32.totalorder %s180_s3, %s577_s17  ;;  %p585_p4 = scmp.lt.s32.totalorder %s180_s3, %s180_s3 }
  0x3d   : > { %p586_p8 = scmp.lt.s32.totalorder %s584_s22, %s577_s17 }
  0x3e   : > { %p580_p7 = pnand %p578_p3, %p534_p5 }
  0x3f   : > { %p587_p6 = por %p586_p8, %p585_p4 }
  0x40   : > { %p581_p13 = pneg %p580_p7 }
  0x42   : > { %p588_p12 = pnand %p587_p6, %p581_p13 }
  0x44   : > { %591 = shalt.err (!%p588_p12)
}
  0x45   : > { %442 = dma.hbm_to_vmem [thread:$0]  (!%p798_p2), %s938_s1, 256, %s180_s3, [#allocation7], %s702_s18, %s702_s18, %s703_s20  }
  0x46   : > { %p948_p0 = scmp.ne.s32.totalorder %s947_s27, 0 }
  0x47   : > { %s193_s4 = sand.u32 (!%p948_p0), 1, %s687_s13   ;;  %p949_p5 = scmp.ne.s32.totalorder (!%p948_p0), %s943_s21, 0 }
  0x48   : > { %191 = sbr.rel (%p948_p0) target bundleno = 135 (0x87), region = 28  ;;  %s420_s5 = sshll.u32 (!%p948_p0), %s193_s4, 4 }
  0x49   : > { %s194_s6 = scalar_lea.sflag (!%p948_p0), [#allocation4], %s193_s4  ;;  %s197_s7 = scalar_lea.vmem (!%p948_p0), [#allocation3], %s420_s5 }
  0x4f   : > { %657 = dma.done.wait (%p949_p5), %s194_s6, 256  }
  0x50   : > { %659 = vsyncadd (%p949_p5), %s194_s6, 4294967040  ;;  %s203_s29 = scalar_lea.sflag [#allocation7], %s193_s4  ;;  %s206_s8 = scalar_lea.vmem [#allocation6], %s420_s5 }
  0x51   : > { %661 = dma.done.wait (%p949_p5), %s203_s29, 256  }
  0x52   : > { %663 = vsyncadd (%p949_p5), %s203_s29, 4294967040  ;;  %s229_s18 = sand.u32 1, %s675_s10   ;;  %v705_v0 = vmov 0.0   ;;  %p423_p2 = scmp.ge.s32.totalorder %s691_s14, 1 }
  0x53   : > { %s870_s20 = sshll.u32 %s229_s18, 3  ;;  %245 = vst [vmem:[#allocation2] sm:$0xff] %v705_v0  ;;  %246 = vst [vmem:[#allocation2 + $0x8] sm:$0xff] %v705_v0  ;;  %v253_v1 = vld [vmem:[%s197_s7] sm:$0xff] (!%p423_p2)  ;;  %v254_v4 = vld [vmem:[%s197_s7 + $0x8] sm:$0xff] (!%p423_p2) }
  0x54   : > { %s231_s27 = scalar_lea.vmem [#allocation8], %s870_s20  ;;  %250 = sbr.rel (%p423_p2) target bundleno = 110 (0x6e), region = 44  ;;  %v259_v2 = vadd.f32 (!%p423_p2), 1e-07, %v253_v1  ;;  %v271_v3 = vsub.f32 (!%p423_p2), 1.0, %v253_v1  ;;  %v272_v7 = vsub.f32 (!%p423_p2), 1.0, %v254_v4 }
  0x55   : > { %v260_v6 = vadd.f32 (!%p423_p2), 1e-07, %v254_v4  ;;  %v255_v9 = vld [vmem:[%s206_s8] sm:$0xff] (!%p423_p2)  ;;  %v256_v11 = vld [vmem:[%s206_s8 + $0x8] sm:$0xff] (!%p423_p2) }
  0x56   : > { %524 = vlog2.f32 (!%p423_p2), %v259_v2  ;;  %v273_v5 = vadd.f32 (!%p423_p2), 1e-07, %v271_v3  ;;  %v274_v8 = vadd.f32 (!%p423_p2), 1e-07, %v272_v7  ;;  %v267_v10 = vsub.f32 (!%p423_p2), 1.0, %v255_v9 }
  0x57   : > { %v257_v12 = vmul.f32 (!%p423_p2), 2.0, %v255_v9  ;;  %v268_v14 = vsub.f32 (!%p423_p2), 1.0, %v256_v11  ;;  %v258_v18 = vmul.f32 (!%p423_p2), 2.0, %v256_v11 }
  0x58   : > { %526 = vlog2.f32 (!%p423_p2), %v273_v5  ;;  %v269_v16 = vmul.f32 (!%p423_p2), 0.5, %v267_v10 }
  0x59   : > { %528 = vlog2.f32 (!%p423_p2), %v260_v6  ;;  %v270_v23 = vmul.f32 (!%p423_p2), 0.5, %v268_v14 }
  0x5a   : > { %530 = vlog2.f32 (!%p423_p2), %v274_v8  ;;  %v251_v26 = vld [vmem:[#allocation2] sm:$0xff] (!%p423_p2)  ;;  %v252_v32 = vld [vmem:[#allocation2 + $0x8] sm:$0xff] (!%p423_p2) }
  0x60   : > { %v525_v13 = vpop.eup %524 }
  0x61   : > { %v262_v15 = vmul.f32 0.6931472, %v525_v13 }
  0x62   : > { %v527_v17 = vpop.eup %526 }
  0x63   : > { %v529_v19 = vpop.eup %528  ;;  %v265_v20 = vmul.f32 %v262_v15, %v257_v12  ;;  %v276_v21 = vmul.f32 0.6931472, %v527_v17 }
  0x64   : > { %v264_v22 = vmul.f32 0.6931472, %v529_v19  ;;  %v531_v24 = vpop.eup %530 }
  0x65   : > { %v279_v25 = vmul.f32 %v276_v21, %v269_v16  ;;  %v278_v28 = vmul.f32 0.6931472, %v531_v24 }
  0x66   : > { %v266_v27 = vmul.f32 %v264_v22, %v258_v18 }
  0x67   : > { %v281_v29 = vadd.f32 %v279_v25, %v265_v20  ;;  %v280_v30 = vmul.f32 %v278_v28, %v270_v23 }
  0x69   : > { %v283_v31 = vadd.f32 %v281_v29, %v251_v26  ;;  %v282_v33 = vadd.f32 %v280_v30, %v266_v27 }
  0x6b   : > { %285 = vst [vmem:[#allocation2] sm:$0xff] %v283_v31  ;;  %v284_v34 = vadd.f32 %v282_v33, %v252_v32 }
  0x6d   : > { %286 = vst [vmem:[#allocation2 + $0x8] sm:$0xff] %v284_v34 }
  0x6e PF: > { %s425_s21 = sshll.u32 %s691_s14, 7  ;;  %s308_s17 = sshll.u32 %s231_s27, 4  ;;  %s882_s17 = int_to_ptr.vmem [resolvable:$true] %s308_s17 }
  0x6f   : > { %s878_s12 = scalar_lea.hbm %s939_s2, %s425_s21  ;;  %s295_s22 = scalar_lea.sflag [#allocation5], %s229_s18 }
  0x70   : > { %s592_s23 = scalar_lea.vmem %s882_s17, 128  ;;  %p950_p9 = scmp.ne.s32.totalorder %s944_s25, 0 }
  0x71   : > { %p593_p8 = scmp.ne.s32.totalorder %s882_s17, %s592_s23  ;;  %s706_s14 = smov [#allocation8]  }
  0x72   : > { %v290_v35 = vld [vmem:[#allocation2] sm:$0xff]  ;;  %s596_s30 = sshll.u32 %s706_s14, 4  ;;  %s597_s30 = int_to_ptr.vmem [resolvable:$false] %s596_s30 }
  0x73   : > { %p594_p10 = pnand %p593_p8, %p950_p9  ;;  %s598_s4 = scalar_lea.vmem %s597_s30, 256 }
  0x74   : > { %v291_v36 = vld [vmem:[#allocation2 + $0x8] sm:$0xff]  ;;  %p599_p1 = scmp.lt.s32.totalorder %s882_s17, %s597_s30  ;;  %p600_p3 = scmp.lt.s32.totalorder %s598_s4, %s592_s23 }
  0x75   : > { %v292_v37 = vadd.f32 %v291_v36, %v290_v35  ;;  %p595_p11 = pneg %p594_p10 }
  0x76   : > { %p601_p7 = por %p600_p3, %p599_p1 }
  0x77   : > { %293 = vst [vmem:[%s231_s27] sm:$0xff] %v292_v37 }
  0x78   : > { %p602_p13 = pnand %p601_p7, %p595_p11 }
  0x7a   : > { %605 = shalt.err (!%p602_p13)
}
  0x7b   : > { %s606_s5 = scalar_lea.hbm %s878_s12, 128  ;;  %s610_s29 = scalar_lea.hbm %s939_s2, 256 }
  0x7c   : > { %p607_p4 = scmp.ne.s32.totalorder %s878_s12, %s606_s5  ;;  %p611_p0 = scmp.lt.u32.totalorder %s878_s12, %s939_s2 }
  0x7d   : > { %p612_p5 = scmp.lt.u32.totalorder %s610_s29, %s606_s5  ;;  %p614_p8 = scmp.lt.u32.totalorder %s606_s5, %s878_s12 }
  0x7e   : > { %p608_p6 = pnand %p607_p4, %p950_p9 }
  0x7f   : > { %p613_p2 = por %p612_p5, %p611_p0 }
  0x80   : > { %p609_p12 = pneg %p608_p6 }
  0x81   : > { %p615_p10 = por %p614_p8, %p613_p2 }
  0x83   : > { %p616_p11 = pnand %p615_p10, %p609_p12 }
  0x85   : > { %619 = shalt.err (!%p616_p11)
}
  0x86   : > { %434 = dma.vmem_to_hbm [thread:$0]  (%p950_p9), %s882_s17, 128, %s878_s12, %s295_s22  }
  0x87 PF: > { %s320_s20 = sand.u32 1, %s671_s9   ;;  %p951_p1 = scmp.ne.s32.totalorder %s945_s26, 0 }
  0x88   : > { %p952_p3 = scmp.ge.s32.totalorder %s699_s16, 2  ;;  %s321_s27 = scalar_lea.sflag [#allocation5], %s320_s20 }
  0x8a   : > { %p444_p7 = pnand %p952_p3, %p951_p1 }
  0x8c   : > { %665 = dma.done.wait (!%p444_p7), %s321_s27, 128  }
  0x8d   : > { %667 = vsyncadd (!%p444_p7), %s321_s27, 4294967168  ;;  %s21_s16 = sadd.s32 1, %s699_s16   ;;  %s953_s9 = smov %s675_s10 }
  0x8e   : > { %p18_p13 = scmp.ge.s32.totalorder %s21_s16, 4   ;;  %s954_s10 = smov %s679_s11 }
  0x8f   : > { %s955_s11 = smov %s780_s24  ;;  %s956_s12 = smov %s687_s13 }
  0x90   : > { %s927_s13 = smov 0   ;;  %s957_s14 = smov %s695_s15 }
  0x91   : > { %s958_s15 = smov %s960_s19  ;;  %20 = sbr.rel (!%p18_p13) target bundleno = 9 (0x9), region = 98 }
  0x98   :  { %326 = vsyncpa [#allocation4], 1 }
  0x99   :  { %328 = vsyncpa [#allocation4 + $0x1], 1 }
  0x9a   :  { %329 = vsyncpa [#allocation7], 1 }
  0x9b   :  { %331 = vsyncpa [#allocation7 + $0x1], 1 }
  0x9c   :  { %332 = vsyncpa [#allocation5], 1 }
  0x9d   :  { %334 = vsyncpa [#allocation5 + $0x1], 1 }

</bundles_post_ra>
